<compile_context>
chip_gen: v7x
topology: tpu7x:2x2x1
jax: 0.10.0
libtpu: 0.0.40
codegen_flags: <defaults>
</compile_context>

<pallas_src>
import jax
import jax.numpy as jnp
from jax.experimental import pallas as pl
from jax.experimental.pallas import tpu as pltpu


_VMEM_LIMIT_BYTES = 32 << 20     # explicit scoped-VMEM cap; <= physical on v5e/v6e (128 MiB) and v7x (64 MiB)
_BLOCK_BUDGET_BYTES = 4 << 20    # per-buffer tile target; x4 (double-buffered in+out) = 16 MiB << 32 MiB


def _chomp_copy_kernel(x_ref, o_ref):
    # Input and output blocks have identical shapes; the chomp happens purely
    # in BlockSpec indexing, so the body is a straight VMEM copy (hidden under
    # the HBM DMA in this mem-bound regime).
    o_ref[...] = x_ref[...]


def _chomp_trim_kernel(x_ref, o_ref):
    # Full-row path: input block is the full (row_block, L) slab; trim the
    # chomped tail in-kernel. Prefix slice starts at lane 0 -> cheap.
    l_out = o_ref.shape[-1]
    o_ref[...] = x_ref[:, :l_out]


def _round_down(v, m):
    return (v // m) * m


def _round_up(v, m):
    return ((v + m - 1) // m) * m


def _row_block_for(rows, target):
    """Largest legal row block not exceeding `target`: full `rows`, else a multiple of 8."""
    if target >= rows:
        return rows
    return max(8, _round_down(target, 8))


def chomp1d(x: jax.Array, chomp_size: int,
            *, block_budget_bytes: int = _BLOCK_BUDGET_BYTES,
            vmem_limit_bytes: int = _VMEM_LIMIT_BYTES) -> jax.Array:
    """Equivalent of x[:, :, :-chomp_size].contiguous() for x of shape (N, C, L)."""
    assert chomp_size > 0, "chomp_size must be positive (matches PyTorch slice :-k)"
    N, C, L = x.shape
    L_out = L - chomp_size
    assert L_out > 0, "chomp_size must be smaller than the sequence length"

    rows = N * C
    dsize = jnp.dtype(x.dtype).itemsize
    x2 = x.reshape(rows, L)  # free view: merges contiguous leading dims

    row_bytes_full = L * dsize

    # ---------------- Path selection ----------------
    # Full-row path: contiguous unmasked output stores, 1-D grid, no 128-multiple
    # constraint (full last dims). Re-reads the chomped tail, so only take it when
    # the tail is a small fraction of L -- or when L_out < 128 and there is no
    # lane-dense alternative anyway.
    full_row_fits = min(rows, 8) * row_bytes_full <= block_budget_bytes
    use_full_row = (L_out < 128) or (chomp_size * 8 <= L and full_row_fits)

    if use_full_row:
        max_rows = max(8, block_budget_bytes // row_bytes_full)
        row_block = _row_block_for(rows, max_rows)
        # v7x has 2 TensorCores: ensure >= 2 blocks along the parallel row axis
        # when the rows are splittable so both cores get work.
        if pl.cdiv(rows, row_block) < 2 and rows >= 16:
            row_block = _row_block_for(rows, _round_up(pl.cdiv(rows, 2), 8))

        grid = (pl.cdiv(rows, row_block),)
        out2 = pl.pallas_call(
            _chomp_trim_kernel,
            out_shape=jax.ShapeDtypeStruct((rows, L_out), x.dtype),
            grid_spec=pltpu.PrefetchScalarGridSpec(
                num_scalar_prefetch=0,
                grid=grid,
                in_specs=[pl.BlockSpec((row_block, L), lambda i: (i, 0))],
                out_specs=pl.BlockSpec((row_block, L_out), lambda i: (i, 0)),
            ),
            compiler_params=pltpu.CompilerParams(
                dimension_semantics=("parallel",),
                vmem_limit_bytes=vmem_limit_bytes,
            ),
        )(x2)
        return out2.reshape(N, C, L_out)

    # ---------------- Column-tiled lane-dense path (L_out >= 128 here) ----------------
    col_max = _round_down(L_out, 128)
    row_block = _row_block_for(rows, 256)
    col_budget = max(128, _round_down(block_budget_bytes // (row_block * dsize), 128))
    col_block = min(col_max, col_budget)
    if col_block == col_max and rows > row_block:
        # Short L_out relative to the budget: grow the row block instead so the
        # per-block byte count stays near the budget (fewer, bigger DMAs).
        row_block = _row_block_for(
            rows, max(row_block, block_budget_bytes // (col_block * dsize)))

    # v7x: keep at least 2 blocks on a parallel axis when splittable.
    if pl.cdiv(rows, row_block) * pl.cdiv(L_out, col_block) < 2:
        if rows >= 16:
            row_block = _row_block_for(rows, _round_up(pl.cdiv(rows, 2), 8))
        elif col_block >= 256:
            col_block = max(128, _round_down(col_block // 2, 128))

    grid = (pl.cdiv(rows, row_block), pl.cdiv(L_out, col_block))

    # NOTE: the last column block's *input* read may extend past L_out (and even
    # past L). Correctness relies on Pallas padding out-of-bounds input blocks
    # and masking the partial output write; do not switch this path to manual
    # DMA without handling that tail explicitly.
    out2 = pl.pallas_call(
        _chomp_copy_kernel,
        out_shape=jax.ShapeDtypeStruct((rows, L_out), x.dtype),
        grid_spec=pltpu.PrefetchScalarGridSpec(
            num_scalar_prefetch=0,
            grid=grid,
            in_specs=[pl.BlockSpec((row_block, col_block), lambda i, j: (i, j))],
            out_specs=pl.BlockSpec((row_block, col_block), lambda i, j: (i, j)),
        ),
        compiler_params=pltpu.CompilerParams(
            dimension_semantics=("parallel", "parallel"),
            vmem_limit_bytes=vmem_limit_bytes,
        ),
    )(x2)
    return out2.reshape(N, C, L_out)


if __name__ == "__main__":
    key = jax.random.PRNGKey(0)

    # Test 1: small shape (full-row path, L_out < 128, single grid step).
    N, C, L = 2, 4, 16
    chomp_size = 3
    x = jax.random.normal(key, (N, C, L), dtype=jnp.float32)
    y = jax.block_until_ready(chomp1d(x, chomp_size))
    y_ref = x[:, :, :-chomp_size]
    assert y.shape == (N, C, L - chomp_size), y.shape
    assert y.dtype == x.dtype
    assert jnp.array_equal(y, y_ref), "Pallas chomp mismatch vs reference (small / full-row)"

    # Test 2: chomp << L (full-row path with the row axis split into 2 blocks
    # so both v7x TensorCores would get work; contiguous unmasked output rows).
    key2 = jax.random.PRNGKey(1)
    N2, C2, L2 = 2, 8, 384
    chomp2 = 3
    x2 = jax.random.normal(key2, (N2, C2, L2), dtype=jnp.float32)
    y2 = jax.block_until_ready(chomp1d(x2, chomp2))
    y2_ref = x2[:, :, :-chomp2]
    assert y2.shape == (N2, C2, L2 - chomp2), y2.shape
    assert jnp.array_equal(y2, y2_ref), "Pallas chomp mismatch vs reference (full-row split)"

    # Test 3: large chomp fraction (column-tiled lane-dense path with a ragged
    # last column block -> masked writeback).
    key3 = jax.random.PRNGKey(2)
    N3, C3, L3 = 2, 8, 512
    chomp3 = 320
    x3 = jax.random.normal(key3, (N3, C3, L3), dtype=jnp.float32)
    y3 = jax.block_until_ready(chomp1d(x3, chomp3))
    y3_ref = x3[:, :, :-chomp3]
    assert y3.shape == (N3, C3, L3 - chomp3), y3.shape
    assert jnp.array_equal(y3, y3_ref), "Pallas chomp mismatch vs reference (column-tiled)"

    print("KERNEL_OK")
</pallas_src>

<mosaic_0001>
module attributes {stable_mosaic.version = 11 : i64} {
  func.func @_chomp_trim_kernel(%arg0: i32, %arg1: memref<8x16xf32, #tpu.memory_space<vmem>>, %arg2: memref<8x13xf32, #tpu.memory_space<vmem>>) attributes {dimension_semantics = [#tpu.dimension_semantics<parallel>], iteration_bounds = array<i64: 1>, scalar_prefetch = 0 : i64, scratch_operands = 0 : i64, tpu.core_type = #tpu.core_type<tc>, window_params = [{transform_indices = @transform_0, window_bounds = array<i64: 8, 16>}, {transform_indices = @transform_1, window_bounds = array<i64: 8, 13>}]} {
    %c0 = arith.constant 0 : index
    %c0_0 = arith.constant 0 : index
    %0 = vector.load %arg1[%c0, %c0_0] : memref<8x16xf32, #tpu.memory_space<vmem>>, vector<8x13xf32>
    %c0_1 = arith.constant 0 : index
    %c0_2 = arith.constant 0 : index
    %1 = vector.load %arg2[%c0_1, %c0_2] : memref<8x13xf32, #tpu.memory_space<vmem>>, vector<8x13xf32>
    tpu.vector_store %arg2[%c0_1, %c0_2], %0 {strides = array<i32>} : memref<8x13xf32, #tpu.memory_space<vmem>>, vector<8x13xf32>,
    return
  }
  func.func @transform_0(%arg0: i32) -> (i32, i32) {
    %c0_i32 = arith.constant 0 : i32
    %c0_i32_0 = arith.constant 0 : i32
    return %arg0, %c0_i32 : i32, i32
  }
  func.func @transform_1(%arg0: i32) -> (i32, i32) {
    %c0_i32 = arith.constant 0 : i32
    %c0_i32_0 = arith.constant 0 : i32
    return %arg0, %c0_i32 : i32, i32
  }
}

</mosaic_0001>

<bundles_post_ra>
// kernel: tpu_custom_call.1
= control target key start
LH: loop header
LB: loop body
LE: loop exit
PB: predicated region body
PF: predicated region fallthrough
CT: control target
= control target key end

     0   :  { %6 = vsyncpa [#allocation3], 0  ;;  %s125_s0 = inlined_call_operand.hbm [shape: f32[8,16], index: 0, kind: input, shape index: {}]   ;;  %s126_s1 = inlined_call_operand.hbm [shape: f32[8,13], index: 1, kind: output, shape index: {}]  }
   0x1   :  { %7 = vsyncpa [#allocation4], 0  ;;  %s89_s6 = smov [#allocation2]   ;;  %s41_s10 = scalar_lea.hbm %s125_s0, 128 }
   0x2   :  { %s14_s7 = sshll.u32 %s89_s6, 4  ;;  %p42_p0 = scmp.ne.s32.totalorder %s125_s0, %s41_s10  ;;  %s15_s7 = int_to_ptr.vmem [resolvable:$true] %s14_s7 }
   0x3   :  { %p45_p1 = scmp.lt.u32.totalorder %s41_s10, %s125_s0 }
   0x5   :  { %p47_p2 = pnand %p45_p1, %p42_p0 }
   0x7   :  { %50 = shalt.err (!%p47_p2)
}
   0x8   :  { %s51_s15 = scalar_lea.vmem %s15_s7, 128  ;;  %p56_p4 = scmp.lt.s32.totalorder %s15_s7, %s15_s7 }
   0x9   :  { %p52_p3 = scmp.ne.s32.totalorder %s15_s7, %s51_s15  ;;  %p57_p5 = scmp.lt.s32.totalorder %s51_s15, %s51_s15 }
   0xb   :  { %p58_p6 = por %p57_p5, %p56_p4 }
   0xd   :  { %p59_p7 = pnand %p58_p6, %p52_p3 }
   0xf   :  { %62 = shalt.err (!%p59_p7)
}
  0x10   :  { %17 = dma.hbm_to_vmem [thread:$0]  %s125_s0, 128, %s15_s7, [#allocation3]  }
  0x11   :  { %85 = dma.done.wait [#allocation3], 128  }
  0x12   :  { %86 = vsyncadd [#allocation3], 4294967168  ;;  %s90_s18 = smov [#allocation5]   ;;  %vm22_vm0 = vcmask 105472   ;;  %v21_v0 = vld [vmem:[#allocation2] sm:$0xff] }
  0x13   :  { %s30_s19 = sshll.u32 %s90_s18, 4  ;;  %23 = vst.msk [vmem:[#allocation5] sm:$0xff] %vm22_vm0, %v21_v0  ;;  %s31_s19 = int_to_ptr.vmem [resolvable:$true] %s30_s19 }
  0x14   :  { %s63_s20 = scalar_lea.vmem %s31_s19, 128  ;;  %p68_p9 = scmp.lt.s32.totalorder %s31_s19, %s31_s19 }
  0x15   :  { %p64_p8 = scmp.ne.s32.totalorder %s31_s19, %s63_s20  ;;  %p69_p10 = scmp.lt.s32.totalorder %s63_s20, %s63_s20 }
  0x17   :  { %p70_p11 = por %p69_p10, %p68_p9 }
  0x19   :  { %p71_p12 = pnand %p70_p11, %p64_p8 }
  0x1b   :  { %74 = shalt.err (!%p71_p12)
}
  0x1c   :  { %s75_s23 = scalar_lea.hbm %s126_s1, 128 }
  0x1d   :  { %p76_p13 = scmp.ne.s32.totalorder %s126_s1, %s75_s23  ;;  %p79_p0 = scmp.lt.u32.totalorder %s75_s23, %s126_s1 }
  0x1f   :  { %p81_p1 = pnand %p79_p0, %p76_p13 }
  0x21   :  { %84 = shalt.err (!%p81_p1)
}
  0x22   :  { %33 = dma.vmem_to_hbm [thread:$0]  %s31_s19, 128, %s126_s1, [#allocation4]  }
  0x23   :  { %87 = dma.done.wait [#allocation4], 128  }
  0x24   :  { %88 = vsyncadd [#allocation4], 4294967168 }
  0x25   :  { %37 = vsyncpa [#allocation3], 1 }
  0x26   :  { %38 = vsyncpa [#allocation4], 1 }

</bundles_post_ra>
